<compile_context>
chip_gen: v7x
topology: tpu7x:2x2x1
jax: 0.10.0
libtpu: 0.0.40
codegen_flags: <defaults>
</compile_context>

<pallas_src>
import jax
import jax.numpy as jnp
from jax.experimental import pallas as pl
from jax.experimental.pallas import tpu as pltpu

WEIGHT_LOW = -0.03
WEIGHT_HIGH = 0.03
FC1 = 400
FC2 = 300


def _round_up(x, m):
    return (x + m - 1) // m * m


def critic_kernel(s_ref, a_ref, w1s_ref, w1a_ref, w2_ref, row_ref, o_ref):
    # Weights (~0.5 MB bf16) + one batch tile of activations fit easily in VMEM.
    wdt = w1s_ref.dtype                 # bf16 by default (f32 optional)
    H1 = w1s_ref.shape[1]               # 512
    H2 = w2_ref.shape[1]                # 384

    # Static slices of the packed 1-row param array (lane-aligned offsets).
    b1 = row_ref[:, :H1]                            # (1, 512) f32
    b2 = row_ref[:, H1:H1 + H2]                     # (1, 384) f32
    w3 = row_ref[:, H1 + H2:H1 + 2 * H2]            # (1, 384) f32
    b3 = row_ref[:, H1 + 2 * H2:][:, :1]            # (1, 1)   f32

    # Layer 1: concat folded into a split matmul, bf16 MXU, f32 accumulation.
    h1 = jnp.dot(s_ref[...].astype(wdt), w1s_ref[...],
                 preferred_element_type=jnp.float32)
    h1 = h1 + jnp.dot(a_ref[...].astype(wdt), w1a_ref[...],
                      preferred_element_type=jnp.float32)
    h1 = jnp.maximum(h1 + b1, 0.0)                  # (TB, 512) lane-dense, f32

    # Layer 2.
    h2 = jnp.dot(h1.astype(wdt), w2_ref[...], preferred_element_type=jnp.float32)
    h2 = jnp.maximum(h2 + b2, 0.0)                  # (TB, 384) lane-dense, f32

    # Layer 3 (out_features == 1): VPU multiply + lane reduce instead of an
    # almost-empty MXU pass.
    v = jnp.sum(h2 * w3, axis=-1, keepdims=True) + b3
    o_ref[...] = v.astype(o_ref.dtype)


def critic_forward(state, action, params, *, block_b=512):
    """state: (B, state_size), action: (B, action_size) -> (B, 1) f32."""
    w1s, w1a, w2, row = params
    B, S = state.shape
    _, A = action.shape
    H1 = w1s.shape[1]
    H2 = w2.shape[1]

    # Batch tile:
    #   B <= 8 : one 8-row tile (single grid point, latency path).
    #   B >  8 : at least 2 grid points so the "parallel" batch axis can shard
    #            over both v7x TensorCores; capped at block_b (default 512) so
    #            per-step overhead is amortized and VMEM stays tiny.
    if B > 8:
        TB = min(block_b, _round_up(-(-B // 2), 8))
    else:
        TB = _round_up(max(B, 1), 8)
    nb = pl.cdiv(B, TB)   # partial tail block is masked by Pallas; no wrapper pad

    def batch_spec(d):
        return pl.BlockSpec((TB, d), lambda i: (i, 0))

    def resident(arr):
        # Full-extent block + constant index_map: DMA'd once, stays VMEM-resident.
        return pl.BlockSpec(arr.shape, lambda i: (0, 0))

    param_bytes = sum(int(p.size) * p.dtype.itemsize for p in (w1s, w1a, w2, row))
    flops = 2 * B * (S * H1 + A * H1 + H1 * H2 + H2)
    bytes_accessed = param_bytes + 4 * (B * (S + A) + B)

    out = pl.pallas_call(
        critic_kernel,
        out_shape=jax.ShapeDtypeStruct((B, 1), jnp.float32),
        grid=(nb,),
        in_specs=[
            batch_spec(S),          # state tile
            batch_spec(A),          # action tile
            resident(w1s), resident(w1a), resident(w2),
            resident(row),          # packed (b1 | b2 | w3 | b3)
        ],
        out_specs=pl.BlockSpec((TB, 1), lambda i: (i, 0)),
        compiler_params=pltpu.CompilerParams(
            dimension_semantics=("parallel",),
        ),
        cost_estimate=pl.CostEstimate(
            flops=flops, transcendentals=0, bytes_accessed=bytes_accessed),
    )(state, action, w1s, w1a, w2, row)

    return out


def init_critic_params(key, state_size, action_size, weights_dtype=jnp.bfloat16):
    """uniform(-0.03, 0.03) init mirroring initialize_weights(), stored in the
    kernel-friendly layout:
      * W1 split into a state half and an action half (removes the concat),
      * hidden dims zero-padded to 512 / 384 (exact under ReLU),
      * matmul operands stored in `weights_dtype` (bf16 default: MXU-native on
        v5e/v6e/v7x, halves weight DMA),
      * b1, b2, w3 (as a row), b3 packed into one (1, 1408) f32 array
        (one resident DMA instead of four)."""
    H1p = _round_up(FC1, 128)   # 512
    H2p = _round_up(FC2, 128)   # 384
    ks = jax.random.split(key, 6)
    u = lambda k, shape: jax.random.uniform(
        k, shape, dtype=jnp.float32, minval=WEIGHT_LOW, maxval=WEIGHT_HIGH)

    # Logical (unpadded) params; (in, out) layout == torch W.T
    w1 = u(ks[0], (state_size + action_size, FC1))
    b1 = u(ks[1], (1, FC1))
    w2 = u(ks[2], (FC1, FC2))
    b2 = u(ks[3], (1, FC2))
    w3 = u(ks[4], (1, FC2))
    b3 = u(ks[5], (1, 1))

    # Split W1 and zero-pad to lane-aligned hidden dims.
    w1s = jnp.zeros((state_size, H1p), jnp.float32).at[:, :FC1].set(w1[:state_size])
    w1a = jnp.zeros((action_size, H1p), jnp.float32).at[:, :FC1].set(w1[state_size:])
    w2p = jnp.zeros((H1p, H2p), jnp.float32).at[:FC1, :FC2].set(w2)

    # Pack (b1 | b2 | w3 | b3) into one f32 row, padded to a lane multiple.
    row_w = H1p + 2 * H2p + 128                      # 1408
    row = jnp.zeros((1, row_w), jnp.float32)
    row = row.at[:, :FC1].set(b1)
    row = row.at[:, H1p:H1p + FC2].set(b2)
    row = row.at[:, H1p + H2p:H1p + H2p + FC2].set(w3)
    row = row.at[:, H1p + 2 * H2p:H1p + 2 * H2p + 1].set(b3)

    # Only the MXU operands use reduced-precision storage; the packed row
    # (biases + final-layer weights) stays f32 (f32 VPU path on all chips).
    return (w1s.astype(weights_dtype),
            w1a.astype(weights_dtype),
            w2p.astype(weights_dtype),
            row)


def critic_ref(state, action, params):
    """Pure-JAX reference mirroring the kernel's dtype path exactly."""
    w1s, w1a, w2, row = params
    H1 = w1s.shape[1]
    H2 = w2.shape[1]
    wdt = w1s.dtype
    b1 = row[:, :H1]
    b2 = row[:, H1:H1 + H2]
    w3 = row[:, H1 + H2:H1 + 2 * H2]
    b3 = row[:, H1 + 2 * H2:H1 + 2 * H2 + 1]
    h1 = (jnp.dot(state.astype(wdt), w1s, preferred_element_type=jnp.float32)
          + jnp.dot(action.astype(wdt), w1a, preferred_element_type=jnp.float32))
    h1 = jnp.maximum(h1 + b1, 0.0)
    h2 = jnp.dot(h1.astype(wdt), w2, preferred_element_type=jnp.float32)
    h2 = jnp.maximum(h2 + b2, 0.0)
    return jnp.sum(h2 * w3, axis=-1, keepdims=True) + b3


if __name__ == "__main__":
    key = jax.random.PRNGKey(0)
    k_param, k_state, k_action = jax.random.split(key, 3)

    state_size = 16
    action_size = 8

    # --- Test 1: default bf16 weights, small batch (single grid point) -------
    batch = 8
    params_bf16 = init_critic_params(k_param, state_size, action_size)
    state = jax.random.normal(k_state, (batch, state_size), dtype=jnp.float32)
    action = jax.random.normal(k_action, (batch, action_size), dtype=jnp.float32)

    out = critic_forward(state, action, params_bf16)
    out = jax.block_until_ready(out)
    ref = critic_ref(state, action, params_bf16)
    assert out.shape == (batch, 1), out.shape
    assert jnp.allclose(out, ref, atol=2e-3, rtol=2e-3), "bf16 mismatch vs reference"

    # --- Test 2: f32 weights, multi-tile grid with a partial tail block ------
    batch2 = 13   # TB=8 -> grid=(2,), second tile has 5 valid rows (masked tail)
    params_f32 = init_critic_params(k_param, state_size, action_size,
                                    weights_dtype=jnp.float32)
    state2 = jax.random.normal(k_state, (batch2, state_size), dtype=jnp.float32)
    action2 = jax.random.normal(k_action, (batch2, action_size), dtype=jnp.float32)

    out2 = critic_forward(state2, action2, params_f32)
    out2 = jax.block_until_ready(out2)
    ref2 = critic_ref(state2, action2, params_f32)
    assert out2.shape == (batch2, 1), out2.shape
    assert jnp.allclose(out2, ref2, atol=1e-4, rtol=1e-4), "f32 mismatch vs reference"

    print("KERNEL_OK")
</pallas_src>

<mosaic_0001>
module attributes {stable_mosaic.version = 11 : i64} {
  func.func @critic_kernel(%arg0: i32, %arg1: memref<8x16xf32, #tpu.memory_space<vmem>>, %arg2: memref<8x8xf32, #tpu.memory_space<vmem>>, %arg3: memref<16x512xbf16, #tpu.memory_space<vmem>>, %arg4: memref<8x512xbf16, #tpu.memory_space<vmem>>, %arg5: memref<512x384xbf16, #tpu.memory_space<vmem>>, %arg6: memref<1x1408xf32, #tpu.memory_space<vmem>>, %arg7: memref<8x1xf32, #tpu.memory_space<vmem>>) attributes {dimension_semantics = [#tpu.dimension_semantics<parallel>], iteration_bounds = array<i64: 1>, scalar_prefetch = 0 : i64, scratch_operands = 0 : i64, tpu.core_type = #tpu.core_type<tc>, window_params = [{transform_indices = @transform_0, window_bounds = array<i64: 8, 16>}, {transform_indices = @transform_1, window_bounds = array<i64: 8, 8>}, {pipeline_mode = #tpu.pipeline_mode<synchronous>, transform_indices = @transform_2, window_bounds = array<i64: 16, 512>}, {pipeline_mode = #tpu.pipeline_mode<synchronous>, transform_indices = @transform_3, window_bounds = array<i64: 8, 512>}, {pipeline_mode = #tpu.pipeline_mode<synchronous>, transform_indices = @transform_4, window_bounds = array<i64: 512, 384>}, {pipeline_mode = #tpu.pipeline_mode<synchronous>, transform_indices = @transform_5, window_bounds = array<i64: 1, 1408>}, {transform_indices = @transform_6, window_bounds = array<i64: 8, 1>}]} {
    %c0 = arith.constant 0 : index
    %c0_0 = arith.constant 0 : index
    %0 = vector.load %arg6[%c0, %c0_0] : memref<1x1408xf32, #tpu.memory_space<vmem>>, vector<1x512xf32>
    %c0_1 = arith.constant 0 : index
    %c512 = arith.constant 512 : index
    %1 = vector.load %arg6[%c0_1, %c512] : memref<1x1408xf32, #tpu.memory_space<vmem>>, vector<1x384xf32>
    %c0_2 = arith.constant 0 : index
    %c896 = arith.constant 896 : index
    %2 = vector.load %arg6[%c0_2, %c896] : memref<1x1408xf32, #tpu.memory_space<vmem>>, vector<1x384xf32>
    %c0_3 = arith.constant 0 : index
    %c1280 = arith.constant 1280 : index
    %3 = vector.load %arg6[%c0_3, %c1280] : memref<1x1408xf32, #tpu.memory_space<vmem>>, vector<1x128xf32>
    %4 = vector.extract_strided_slice %3 {offsets = [0, 0], sizes = [1, 1], strides = [1, 1]} : vector<1x128xf32> to vector<1x1xf32>
    %c0_4 = arith.constant 0 : index
    %c0_5 = arith.constant 0 : index
    %5 = vector.load %arg1[%c0_4, %c0_5] : memref<8x16xf32, #tpu.memory_space<vmem>>, vector<8x16xf32>
    %6 = arith.truncf %5 : vector<8x16xf32> to vector<8x16xbf16>
    %c0_6 = arith.constant 0 : index
    %c0_7 = arith.constant 0 : index
    %7 = vector.load %arg3[%c0_6, %c0_7] : memref<16x512xbf16, #tpu.memory_space<vmem>>, vector<16x512xbf16>
    %cst = arith.constant dense<0.000000e+00> : vector<8x512xf32>
    %8 = tpu.matmul %6, %7, %cst {dimension_numbers = #tpu.dot_dimension_numbers<[1], [0], [0], [1], [0, 0, 1, 1], [], []>} : vector<8x16xbf16>, vector<16x512xbf16>, vector<8x512xf32> -> vector<8x512xf32>
    %c0_8 = arith.constant 0 : index
    %c0_9 = arith.constant 0 : index
    %9 = vector.load %arg2[%c0_8, %c0_9] : memref<8x8xf32, #tpu.memory_space<vmem>>, vector<8x8xf32>
    %10 = arith.truncf %9 : vector<8x8xf32> to vector<8x8xbf16>
    %c0_10 = arith.constant 0 : index
    %c0_11 = arith.constant 0 : index
    %11 = vector.load %arg4[%c0_10, %c0_11] : memref<8x512xbf16, #tpu.memory_space<vmem>>, vector<8x512xbf16>
    %cst_12 = arith.constant dense<0.000000e+00> : vector<8x512xf32>
    %12 = tpu.matmul %10, %11, %cst_12 {dimension_numbers = #tpu.dot_dimension_numbers<[1], [0], [0], [1], [0, 0, 1, 1], [], []>} : vector<8x8xbf16>, vector<8x512xbf16>, vector<8x512xf32> -> vector<8x512xf32>
    %13 = arith.addf %8, %12 : vector<8x512xf32>
    %14 = vector.broadcast %0 : vector<1x512xf32> to vector<8x512xf32>
    %15 = arith.addf %13, %14 : vector<8x512xf32>
    %cst_13 = arith.constant 0.000000e+00 : f32
    %16 = vector.broadcast %cst_13 : f32 to vector<8x512xf32>
    %17 = arith.maximumf %15, %16 : vector<8x512xf32>
    %18 = arith.truncf %17 : vector<8x512xf32> to vector<8x512xbf16>
    %c0_14 = arith.constant 0 : index
    %c0_15 = arith.constant 0 : index
    %19 = vector.load %arg5[%c0_14, %c0_15] : memref<512x384xbf16, #tpu.memory_space<vmem>>, vector<512x384xbf16>
    %cst_16 = arith.constant dense<0.000000e+00> : vector<8x384xf32>
    %20 = tpu.matmul %18, %19, %cst_16 {dimension_numbers = #tpu.dot_dimension_numbers<[1], [0], [0], [1], [0, 0, 1, 1], [], []>} : vector<8x512xbf16>, vector<512x384xbf16>, vector<8x384xf32> -> vector<8x384xf32>
    %21 = vector.broadcast %1 : vector<1x384xf32> to vector<8x384xf32>
    %22 = arith.addf %20, %21 : vector<8x384xf32>
    %cst_17 = arith.constant 0.000000e+00 : f32
    %23 = vector.broadcast %cst_17 : f32 to vector<8x384xf32>
    %24 = arith.maximumf %22, %23 : vector<8x384xf32>
    %25 = vector.broadcast %2 : vector<1x384xf32> to vector<8x384xf32>
    %26 = arith.mulf %24, %25 : vector<8x384xf32>
    %cst_18 = arith.constant dense<0.000000e+00> : vector<8xf32>
    %27 = vector.multi_reduction <add>, %26, %cst_18 [1] : vector<8x384xf32> to vector<8xf32>
    %28 = vector.shape_cast %27 : vector<8xf32> to vector<8x1xf32>
    %29 = vector.broadcast %4 : vector<1x1xf32> to vector<8x1xf32>
    %30 = arith.addf %28, %29 : vector<8x1xf32>
    %c0_19 = arith.constant 0 : index
    %c0_20 = arith.constant 0 : index
    %31 = vector.load %arg7[%c0_19, %c0_20] : memref<8x1xf32, #tpu.memory_space<vmem>>, vector<8x1xf32>
    tpu.vector_store %arg7[%c0_19, %c0_20], %30 {strides = array<i32>} : memref<8x1xf32, #tpu.memory_space<vmem>>, vector<8x1xf32>,
    return
  }
  func.func @transform_0(%arg0: i32) -> (i32, i32) {
    %c0_i32 = arith.constant 0 : i32
    %c0_i32_0 = arith.constant 0 : i32
    return %arg0, %c0_i32 : i32, i32
  }
  func.func @transform_1(%arg0: i32) -> (i32, i32) {
    %c0_i32 = arith.constant 0 : i32
    %c0_i32_0 = arith.constant 0 : i32
    return %arg0, %c0_i32 : i32, i32
  }
  func.func @transform_2(%arg0: i32) -> (i32, i32) {
    %c0_i32 = arith.constant 0 : i32
    %c0_i32_0 = arith.constant 0 : i32
    %c0_i32_1 = arith.constant 0 : i32
    return %c0_i32, %c0_i32_0 : i32, i32
  }
  func.func @transform_3(%arg0: i32) -> (i32, i32) {
    %c0_i32 = arith.constant 0 : i32
    %c0_i32_0 = arith.constant 0 : i32
    %c0_i32_1 = arith.constant 0 : i32
    return %c0_i32, %c0_i32_0 : i32, i32
  }
  func.func @transform_4(%arg0: i32) -> (i32, i32) {
    %c0_i32 = arith.constant 0 : i32
    %c0_i32_0 = arith.constant 0 : i32
    %c0_i32_1 = arith.constant 0 : i32
    return %c0_i32, %c0_i32_0 : i32, i32
  }
  func.func @transform_5(%arg0: i32) -> (i32, i32) {
    %c0_i32 = arith.constant 0 : i32
    %c0_i32_0 = arith.constant 0 : i32
    %c0_i32_1 = arith.constant 0 : i32
    return %c0_i32, %c0_i32_0 : i32, i32
  }
  func.func @transform_6(%arg0: i32) -> (i32, i32) {
    %c0_i32 = arith.constant 0 : i32
    %c0_i32_0 = arith.constant 0 : i32
    return %arg0, %c0_i32 : i32, i32
  }
}

</mosaic_0001>

<bundles_post_ra>
// kernel: tpu_custom_call.1
= control target key start
LH: loop header
LB: loop body
LE: loop exit
PB: predicated region body
PF: predicated region fallthrough
CT: control target
= control target key end

     0   :  { %11 = vsyncpa [#allocation3], 0  ;;  %s1791_s0 = inlined_call_operand.hbm [shape: f32[8,16], index: 0, kind: input, shape index: {}]   ;;  %s1792_s1 = inlined_call_operand.hbm [shape: f32[8,8], index: 1, kind: input, shape index: {}]   ;;  %s1793_s2 = inlined_call_operand.hbm [shape: bf16[16,512], index: 2, kind: input, shape index: {}]   ;;  %s1794_s3 = inlined_call_operand.hbm [shape: bf16[8,512], index: 3, kind: input, shape index: {}]   ;;  %s1795_s4 = inlined_call_operand.hbm [shape: bf16[512,384], index: 4, kind: input, shape index: {}]   ;;  %s1796_s5 = inlined_call_operand.vmem [shape: f32[1,1408], index: 5, kind: input, shape index: {}]   ;;  %s1797_s6 = inlined_call_operand.vmem [shape: f32[8,1], index: 6, kind: output, shape index: {}]  }
   0x1   :  { %12 = vsyncpa [#allocation5], 0 }
   0x2   :  { %13 = vsyncpa [#allocation8], 0  ;;  %s1633_s21 = smov [#allocation4]   ;;  %s1634_s23 = smov [#allocation7]  }
   0x3   :  { %s30_s22 = sshll.u32 %s1633_s21, 4  ;;  %s52_s24 = sshll.u32 %s1634_s23, 4  ;;  %s31_s22 = int_to_ptr.vmem [resolvable:$true] %s30_s22  ;;  %s53_s24 = int_to_ptr.vmem [resolvable:$true] %s52_s24 }
   0x4   :  { %s1517_s27 = scalar_lea.hbm %s1792_s1, 128 }
   0x5   :  { %p1518_p0 = scmp.ne.s32.totalorder %s1792_s1, %s1517_s27  ;;  %p1521_p1 = scmp.lt.u32.totalorder %s1517_s27, %s1792_s1 }
   0x7   :  { %p1523_p2 = pnand %p1521_p1, %p1518_p0 }
   0x9   :  { %1526 = shalt.err (!%p1523_p2)
}
   0xa   :  { %s1527_s8 = scalar_lea.vmem %s31_s22, 128  ;;  %p1532_p4 = scmp.lt.s32.totalorder %s31_s22, %s31_s22 }
   0xb   :  { %p1528_p3 = scmp.ne.s32.totalorder %s31_s22, %s1527_s8  ;;  %p1533_p5 = scmp.lt.s32.totalorder %s1527_s8, %s1527_s8 }
   0xd   :  { %p1534_p6 = por %p1533_p5, %p1532_p4 }
   0xf   :  { %p1535_p7 = pnand %p1534_p6, %p1528_p3 }
  0x11   :  { %1538 = shalt.err (!%p1535_p7)
}
  0x12   :  { %33 = dma.hbm_to_vmem [thread:$0]  %s1792_s1, 128, %s31_s22, [#allocation5]  }
  0x13   :  { %s1539_s13 = scalar_lea.hbm %s1794_s3, 256 }
  0x14   :  { %p1540_p8 = scmp.ne.s32.totalorder %s1794_s3, %s1539_s13  ;;  %p1543_p9 = scmp.lt.u32.totalorder %s1539_s13, %s1794_s3 }
  0x16   :  { %p1545_p10 = pnand %p1543_p9, %p1540_p8 }
  0x18   :  { %1548 = shalt.err (!%p1545_p10)
}
  0x19   :  { %s1549_s18 = scalar_lea.vmem %s53_s24, 256  ;;  %p1554_p12 = scmp.lt.s32.totalorder %s53_s24, %s53_s24 }
  0x1a   :  { %p1550_p11 = scmp.ne.s32.totalorder %s53_s24, %s1549_s18  ;;  %p1555_p13 = scmp.lt.s32.totalorder %s1549_s18, %s1549_s18 }
  0x1c   :  { %p1556_p0 = por %p1555_p13, %p1554_p12 }
  0x1e   :  { %p1557_p1 = pnand %p1556_p0, %p1550_p11 }
  0x20   :  { %1560 = shalt.err (!%p1557_p1)
}
  0x21   :  { %55 = dma.hbm_to_vmem [thread:$0]  %s1794_s3, 256, %s53_s24, [#allocation8]  }
  0x22   :  { %s1635_s20 = smov [#allocation2]   ;;  %s1636_s22 = smov [#allocation6]  }
  0x23   :  { %s20_s21 = sshll.u32 %s1635_s20, 4  ;;  %s39_s23 = sshll.u32 %s1636_s22, 4  ;;  %s21_s21 = int_to_ptr.vmem [resolvable:$true] %s20_s21  ;;  %s1702_s23 = int_to_ptr.vmem [resolvable:$true] %s39_s23 }
  0x24   :  { %s1561_s27 = scalar_lea.hbm %s1791_s0, 128 }
  0x25   :  { %p1562_p2 = scmp.ne.s32.totalorder %s1791_s0, %s1561_s27  ;;  %p1565_p3 = scmp.lt.u32.totalorder %s1561_s27, %s1791_s0 }
  0x27   :  { %p1567_p4 = pnand %p1565_p3, %p1562_p2 }
  0x29   :  { %1570 = shalt.err (!%p1567_p4)
}
  0x2a   :  { %s1571_s3 = scalar_lea.vmem %s21_s21, 128  ;;  %p1576_p6 = scmp.lt.s32.totalorder %s21_s21, %s21_s21 }
  0x2b   :  { %p1572_p5 = scmp.ne.s32.totalorder %s21_s21, %s1571_s3  ;;  %p1577_p7 = scmp.lt.s32.totalorder %s1571_s3, %s1571_s3 }
  0x2d   :  { %p1578_p8 = por %p1577_p7, %p1576_p6 }
  0x2f   :  { %p1579_p9 = pnand %p1578_p8, %p1572_p5 }
  0x31   :  { %1582 = shalt.err (!%p1579_p9)
}
  0x32   :  { %23 = dma.hbm_to_vmem [thread:$0]  %s1791_s0, 128, %s21_s21, [#allocation3]  }
  0x33   :  { %s1583_s11 = scalar_lea.hbm %s1793_s2, 512 }
  0x34   :  { %p1584_p10 = scmp.ne.s32.totalorder %s1793_s2, %s1583_s11  ;;  %p1587_p11 = scmp.lt.u32.totalorder %s1583_s11, %s1793_s2 }
  0x36   :  { %p1589_p12 = pnand %p1587_p11, %p1584_p10 }
  0x38   :  { %1592 = shalt.err (!%p1589_p12)
}
  0x39   :  { %s1593_s16 = scalar_lea.vmem %s1702_s23, 512  ;;  %p1598_p0 = scmp.lt.s32.totalorder %s1702_s23, %s1702_s23 }
  0x3a   :  { %p1594_p13 = scmp.ne.s32.totalorder %s1702_s23, %s1593_s16  ;;  %p1599_p1 = scmp.lt.s32.totalorder %s1593_s16, %s1593_s16 }
  0x3c   :  { %p1600_p2 = por %p1599_p1, %p1598_p0 }
  0x3e   :  { %p1601_p3 = pnand %p1600_p2, %p1594_p13 }
  0x40   :  { %1604 = shalt.err (!%p1601_p3)
}
  0x41   :  { %s1637_s0 = smov 256   ;;  %s1638_s17 = smov 16  }
  0x42   :  { %45 = dma.hbm_to_vmem [thread:$0]  %s1793_s2, 512, %s1702_s23, [#allocation5], %s1637_s0, %s1637_s0, %s1638_s17  }
  0x43   :  { %s1639_s19 = smov [#allocation9]   ;;  %s1605_s25 = scalar_lea.hbm %s1795_s4, 12288 }
  0x44   :  { %s61_s20 = sshll.u32 %s1639_s19, 4  ;;  %p1606_p4 = scmp.ne.s32.totalorder %s1795_s4, %s1605_s25  ;;  %s62_s20 = int_to_ptr.vmem [resolvable:$true] %s61_s20 }
  0x45   :  { %p1609_p5 = scmp.lt.u32.totalorder %s1605_s25, %s1795_s4 }
  0x47   :  { %p1611_p6 = pnand %p1609_p5, %p1606_p4 }
  0x49   :  { %1614 = shalt.err (!%p1611_p6)
}
  0x4a   :  { %s1615_s30 = scalar_lea.vmem %s62_s20, 12288  ;;  %p1620_p8 = scmp.lt.s32.totalorder %s62_s20, %s62_s20 }
  0x4b   :  { %p1616_p7 = scmp.ne.s32.totalorder %s62_s20, %s1615_s30  ;;  %p1621_p9 = scmp.lt.s32.totalorder %s1615_s30, %s1615_s30 }
  0x4d   :  { %p1622_p10 = por %p1621_p9, %p1620_p8 }
  0x4f   :  { %p1623_p11 = pnand %p1622_p10, %p1616_p7 }
  0x51   :  { %1626 = shalt.err (!%p1623_p11)
}
  0x52   :  { %s1640_s2 = smov 192   ;;  %s1641_s23 = smov 12  }
  0x53   :  { %67 = dma.hbm_to_vmem [thread:$0]  %s1795_s4, 12288, %s62_s20, [#allocation8], %s1640_s2, %s1640_s2, %s1641_s23  }
  0x54   :  { %1627 = dma.done.wait [#allocation3], 128  }
  0x55   :  { %1628 = vsyncadd [#allocation3], 4294967168 }
  0x56   :  { %1629 = dma.done.wait [#allocation5], 640  }
  0x57   :  { %1630 = vsyncadd [#allocation5], 4294966656 }
  0x58   :  { %1631 = dma.done.wait [#allocation8], 12544  }
  0x59   :  { %1632 = vsyncadd [#allocation8], 4294954752  ;;  %v1642_v0 = vmov 0   ;;  %v98_v1 = vld [vmem:[#allocation7] sm:$0xff]  ;;  %vm114_vm0 = vcmask 1043456   ;;  %v96_v2 = vld [vmem:[#allocation4] sm:$0xff] }
  0x5a   :  { %159 = vmatprep.mubr.bf16.mxu1 %v1642_v0  ;;  %v99_v3 = vld [vmem:[#allocation7 + $0x8] sm:$0xff]  ;;  %v1209_v4 = vcombine.high %v98_v1, %v98_v1  ;;  %v1208_v5 = vcombine.low %v98_v1, %v98_v1  ;;  %v97_v9 = vpack.c.bf16 %v96_v2, %v96_v2  ;;  %v1385_v10 = vld [vmem:[#allocation6 + $0x4] ss:$16 sps:$4 sm:$0xff]   ;;  %vm110_vm1 = vcmask 64512   ;;  %v1391_v13 = vld [vmem:[#allocation9] ss:$12 sps:$4 sm:$0xff]  }
  0x5b   :  { %v1211_v6 = vcombine.high %v99_v3, %v99_v3  ;;  %v1210_v7 = vcombine.low %v99_v3, %v99_v3  ;;  %v1389_v11 = vld [vmem:[#allocation9 + $0x4] ss:$12 sps:$4 sm:$0xff]   ;;  %v1392_v14 = vld [vmem:[#allocation9 + $0x1c] ss:$12 sps:$4 sm:$0xff]   ;;  %v1395_v16 = vld [vmem:[#allocation9 + $0x34] ss:$12 sps:$4 sm:$0xff]  }
  0x5c   :  { %1212 = vmatprep.subr.msk.bf16.mxu1 %vm114_vm0, %v1209_v4  ;;  %v116_v8 = vsel %vm114_vm0, %v1208_v5, 0  ;;  %1004 = vmatprep.subr.bf16.mxu0 %v1389_v11  ;;  %v1394_v15 = vld [vmem:[#allocation9 + $0x18] ss:$12 sps:$4 sm:$0xff]   ;;  %v1383_v17 = vld [vmem:[#allocation6] ss:$16 sps:$4 sm:$0xff]   ;;  %vm229_vm2 = vcmask 130048  }
  0x5d   :  { %128 = vmatpush1.bf16.msra.mxu1 %v116_v8  ;;  %v122_v12 = vsel %vm114_vm0, %v1210_v7, 0  ;;  %1005 = vmatpush1.bf16.msra.mxu0 %v1391_v13  ;;  %v1397_v18 = vld [vmem:[#allocation9 + $0x30] ss:$12 sps:$4 sm:$0xff]   ;;  %v1398_v20 = vld [vmem:[#allocation9 + $0x4c] ss:$12 sps:$4 sm:$0xff]   ;;  %v90_v22 = vld [vmem:[#allocation2] sm:$0xff]  ;;  %v316_v7 = vlaneseq }
  0x5e   :  { %1214 = vmatprep.subr.msk.bf16.mxu1 %vm114_vm0, %v1211_v6  ;;  %1006 = vmatprep.subr.bf16.mxu0 %v1392_v14  ;;  %v1388_v19 = vld [vmem:[#allocation6 + $0xc] ss:$16 sps:$4 sm:$0xff]   ;;  %v1400_v21 = vld [vmem:[#allocation9 + $0x48] ss:$12 sps:$4 sm:$0xff]   ;;  %v1401_v23 = vld [vmem:[#allocation9 + $0x64] ss:$12 sps:$4 sm:$0xff]   ;;  %v91_v25 = vpack.c.bf16 %v90_v22, %v90_v22 }
  0x5f   :  { %v1386_v24 = vld [vmem:[#allocation6 + $0x8] ss:$16 sps:$4 sm:$0xff]   ;;  %v1403_v26 = vld [vmem:[#allocation9 + $0x60] ss:$12 sps:$4 sm:$0xff]   ;;  %v1409_v31 = vld [vmem:[#allocation9 + $0x90] ss:$12 sps:$4 sm:$0xff]  }
  0x60   :  { %1213 = vmatmul.mubr.msk.bf16.vlgmr.msra.gmra.mrb[0].mxu1 %vm110_vm1, %v97_v9  ;;  %v1404_v27 = vld [vmem:[#allocation9 + $0x7c] ss:$12 sps:$4 sm:$0xff]   ;;  %v1406_v28 = vld [vmem:[#allocation9 + $0x78] ss:$12 sps:$4 sm:$0xff]   ;;  %v1407_v30 = vld [vmem:[#allocation9 + $0x94] ss:$12 sps:$4 sm:$0xff]  }
  0x61   :  { %169 = vmatpush1.bf16.msra.mxu1 %v122_v12  ;;  %200 = vmatprep.mubr.bf16.mxu1 %v1642_v0  ;;  %v1415_v29 = vld [vmem:[#allocation9 + $0xc8] ss:$12 sps:$4 sm:$0xff]   ;;  %v1410_v32 = vld [vmem:[#allocation9 + $0xac] ss:$12 sps:$4 sm:$0xff]   ;;  %v1413_v36 = vld [vmem:[#allocation9 + $0xc4] ss:$12 sps:$4 sm:$0xff]  }
  0x62   :  { %233 = vmatprep.subr.bf16.mxu1 %v1385_v10  ;;  %1007 = vmatpush1.bf16.msra.mxu0 %v1394_v15  ;;  %v1417_v33 = vld [vmem:[#allocation9 + $0x8] ss:$12 sps:$4 sm:$0xff]   ;;  %v1420_v34 = vld [vmem:[#allocation9 + $0xe0] ss:$12 sps:$4 sm:$0xff]   ;;  %v1421_v40 = vld [vmem:[#allocation9 + $0xd8] ss:$12 sps:$4 sm:$0xff]  }
  0x63   :  { %1008 = vmatprep.subr.bf16.mxu0 %v1395_v16  ;;  %v1412_v35 = vld [vmem:[#allocation9 + $0xa8] ss:$12 sps:$4 sm:$0xff]   ;;  %v1422_v37 = vld [vmem:[#allocation9 + $0x20] ss:$12 sps:$4 sm:$0xff]   ;;  %v1425_v42 = vld [vmem:[#allocation9 + $0xf8] ss:$12 sps:$4 sm:$0xff]  }
  0x64   :  { %v1416_v38 = vld [vmem:[#allocation9 + $0xc0] ss:$12 sps:$4 sm:$0xff]   ;;  %v1418_v39 = vld [vmem:[#allocation9 + $0xdc] ss:$12 sps:$4 sm:$0xff]   ;;  %v1427_v44 = vld [vmem:[#allocation9 + $0x38] ss:$12 sps:$4 sm:$0xff]  }
  0x65   :  { %v1423_v41 = vld [vmem:[#allocation9 + $0xf4] ss:$12 sps:$4 sm:$0xff]   ;;  %v1426_v43 = vld [vmem:[#allocation9 + $0xf0] ss:$12 sps:$4 sm:$0xff]   ;;  %v1428_v45 = vld [vmem:[#allocation9 + $0x10c] ss:$12 sps:$4 sm:$0xff]  }
  0x66   :  { %1009 = vmatpush1.bf16.msra.mxu0 %v1397_v18  ;;  %v1430_v46 = vld [vmem:[#allocation9 + $0x110] ss:$12 sps:$4 sm:$0xff]   ;;  %v1431_v47 = vld [vmem:[#allocation9 + $0x108] ss:$12 sps:$4 sm:$0xff]   ;;  %v1436_v51 = vld [vmem:[#allocation9 + $0x120] ss:$12 sps:$4 sm:$0xff]  }
  0x67   :  { %1010 = vmatprep.subr.bf16.mxu0 %v1398_v20  ;;  %v1432_v48 = vld [vmem:[#allocation9 + $0x50] ss:$12 sps:$4 sm:$0xff]   ;;  %v1435_v50 = vld [vmem:[#allocation9 + $0x128] ss:$12 sps:$4 sm:$0xff]   ;;  %v1440_v54 = vld [vmem:[#allocation9 + $0x140] ss:$12 sps:$4 sm:$0xff]  }
  0x68   :  { %1215 = vmatmul.mubr.msk.bf16.vlgmr.msra.gmra.mrb[4].mxu1 %vm110_vm1, %v97_v9  ;;  %v1433_v49 = vld [vmem:[#allocation9 + $0x124] ss:$12 sps:$4 sm:$0xff]   ;;  %v1437_v52 = vld [vmem:[#allocation9 + $0x68] ss:$12 sps:$4 sm:$0xff]   ;;  %v1442_v56 = vld [vmem:[#allocation9 + $0x80] ss:$12 sps:$4 sm:$0xff]  }
  0x69   :  { %234 = vmatpush1.bf16.msra.mxu1 %v1383_v17  ;;  %265 = vmatprep.mubr.bf16.mxu1 %v1642_v0  ;;  %v1438_v53 = vld [vmem:[#allocation9 + $0x13c] ss:$12 sps:$4 sm:$0xff]   ;;  %v1441_v55 = vld [vmem:[#allocation9 + $0x138] ss:$12 sps:$4 sm:$0xff]   ;;  %v1443_v57 = vld [vmem:[#allocation9 + $0x154] ss:$12 sps:$4 sm:$0xff]  }
  0x6a   :  { %274 = vmatprep.subr.bf16.mxu1 %v1388_v19  ;;  %1011 = vmatpush1.bf16.msra.mxu0 %v1400_v21  ;;  %v1445_v58 = vld [vmem:[#allocation9 + $0x158] ss:$12 sps:$4 sm:$0xff]   ;;  %v1446_v59 = vld [vmem:[#allocation9 + $0x150] ss:$12 sps:$4 sm:$0xff]   ;;  %v1451_v63 = vld [vmem:[#allocation9 + $0x168] ss:$12 sps:$4 sm:$0xff]  }
  0x6b   :  { %1012 = vmatprep.subr.bf16.mxu0 %v1401_v23  ;;  %v1447_v60 = vld [vmem:[#allocation9 + $0x98] ss:$12 sps:$4 sm:$0xff]   ;;  %v1450_v62 = vld [vmem:[#allocation9 + $0x170] ss:$12 sps:$4 sm:$0xff]   ;;  %v1456_v2 = vld [vmem:[#allocation9 + $0x248] ss:$12 sps:$4 sm:$0xff]  }
  0x6c   :  { %v1448_v61 = vld [vmem:[#allocation9 + $0x16c] ss:$12 sps:$4 sm:$0xff]   ;;  %v1455_v1 = vld [vmem:[#allocation9 + $0x184] ss:$12 sps:$4 sm:$0xff]   ;;  %v1749_v8 = vshrl.u32 %v316_v7, 7  ;;  %vm1199_vm3 = vcmask 7168  }
  0x6d   :  { %v1757_v14 = vld [vmem:[%s1796_s5] sm:$0xf] }
  0x6e   :  { %1013 = vmatpush1.bf16.msra.mxu0 %v1403_v26  ;;  %v1752_v13 = vsub.s32 0, %v1749_v8  ;;  %v1760_v15 = vsub.s32 1, %v1749_v8  ;;  %v1491_v7 = vld [vmem:[#allocation9 + $0x2f0] ss:$12 sps:$4 sm:$0xff]  }
  0x6f   :  { %1014 = vmatprep.subr.bf16.mxu0 %v1404_v27 }
  0x70   :  { %1220 = vmatmul.mubr.msk.bf16.vlgmr.msra.gmra.mrb[8].mxu1 %vm229_vm2, %v91_v25  ;;  %v319_v16 = vrot.slane %v1757_v14, %v1752_v13  ;;  %v323_v18 = vrot.slane %v1757_v14, %v1760_v15 }
  0x71   :  { %275 = vmatpush1.bf16.msra.mxu1 %v1386_v24  ;;  %306 = vmatprep.mubr.bf16.mxu1 %v1642_v0  ;;  %v1452_v0 = vld [vmem:[#allocation9 + $0xb0] ss:$12 sps:$4 sm:$0xff]  }
  0x72   :  { %1319 = vmatprep.subr.bf16.mxu1 %v1415_v29  ;;  %1015 = vmatpush1.bf16.msra.mxu0 %v1406_v28 }
  0x73   :  { %1016 = vmatprep.subr.bf16.mxu0 %v1407_v30 }
  0x76   :  { %1017 = vmatpush1.bf16.msra.mxu0 %v1409_v31 }
  0x77   :  { %1018 = vmatprep.subr.bf16.mxu0 %v1410_v32  ;;  %v1453_v32 = vld [vmem:[#allocation9 + $0x180] ss:$12 sps:$4 sm:$0xff]  }
  0x78   :  { %1221 = vmatmul.mubr.msk.bf16.vlgmr.msra.gmra.mrb[12].mxu1 %vm229_vm2, %v91_v25  ;;  %v330_v25 = vsub.s32 3, %v1749_v8 }
  0x79   :  { %1320 = vmatpush3.bf16.msra.mxu1 %v1417_v33  ;;  %v1457_v33 = vld [vmem:[#allocation9 + $0x188] ss:$12 sps:$4 sm:$0xff]  }
  0x7a   :  { %1321 = vmatprep.subr.bf16.mxu1 %v1420_v34  ;;  %1019 = vmatpush1.bf16.msra.mxu0 %v1412_v35  ;;  %v331_v30 = vrot.slane %v1757_v14, %v330_v25  ;;  %v1508_v25 = vld [vmem:[#allocation9 + $0x2b8] ss:$12 sps:$4 sm:$0xff]  }
  0x7b   :  { %1020 = vmatprep.subr.bf16.mxu0 %v1413_v36 }
  0x7d   :  { %1322 = vmatpush3.bf16.msra.mxu1 %v1422_v37  ;;  %v1460_v37 = vld [vmem:[#allocation9 + $0x19c] ss:$12 sps:$4 sm:$0xff]  }
  0x7e   :  { %1021 = vmatpush1.bf16.msra.mxu0 %v1416_v38  ;;  %1323 = vmatprep.subr.bf16.mxu1 %v1425_v42  ;;  %v1461_v38 = vld [vmem:[#allocation9 + $0x260] ss:$12 sps:$4 sm:$0xff]  }
  0x7f   :  { %1022 = vmatprep.subr.bf16.mxu0 %v1418_v39 }
  0x81   :  { %1324 = vmatpush3.bf16.msra.mxu1 %v1427_v44  ;;  %v1462_v44 = vld [vmem:[#allocation9 + $0x1a0] ss:$12 sps:$4 sm:$0xff]  }
  0x82   :  { %1023 = vmatpush1.bf16.msra.mxu0 %v1421_v40  ;;  %1325 = vmatprep.subr.bf16.mxu1 %v1430_v46  ;;  %v1466_v46 = vld [vmem:[#allocation9 + $0x278] ss:$12 sps:$4 sm:$0xff]  }
  0x83   :  { %1024 = vmatprep.subr.bf16.mxu0 %v1423_v41 }
  0x85   :  { %1326 = vmatpush3.bf16.msra.mxu1 %v1432_v48 }
  0x86   :  { %1025 = vmatpush1.bf16.msra.mxu0 %v1426_v43  ;;  %1327 = vmatprep.subr.bf16.mxu1 %v1435_v50  ;;  %v1458_v43 = vld [vmem:[#allocation9 + $0x198] ss:$12 sps:$4 sm:$0xff]  }
  0x87   :  { %1026 = vmatprep.subr.bf16.mxu0 %v1428_v45  ;;  %v1465_v45 = vld [vmem:[#allocation9 + $0x1b4] ss:$12 sps:$4 sm:$0xff]   ;;  %v1467_v50 = vld [vmem:[#allocation9 + $0x1b8] ss:$12 sps:$4 sm:$0xff]  }
  0x89   :  { %1328 = vmatpush3.bf16.msra.mxu1 %v1437_v52  ;;  %v1471_v52 = vld [vmem:[#allocation9 + $0x290] ss:$12 sps:$4 sm:$0xff]  }
  0x8a   :  { %1027 = vmatpush1.bf16.msra.mxu0 %v1431_v47  ;;  %1329 = vmatprep.subr.bf16.mxu1 %v1440_v54  ;;  %v1472_v54 = vld [vmem:[#allocation9 + $0x1d0] ss:$12 sps:$4 sm:$0xff]  }
  0x8b   :  { %1028 = vmatprep.subr.bf16.mxu0 %v1433_v49  ;;  %v1463_v49 = vld [vmem:[#allocation9 + $0x1b0] ss:$12 sps:$4 sm:$0xff]  }
  0x8d   :  { %1330 = vmatpush3.bf16.msra.mxu1 %v1442_v56  ;;  %v1476_v56 = vld [vmem:[#allocation9 + $0x2a8] ss:$12 sps:$4 sm:$0xff]  }
  0x8e   :  { %1029 = vmatpush1.bf16.msra.mxu0 %v1436_v51  ;;  %1331 = vmatprep.subr.bf16.mxu1 %v1445_v58  ;;  %v1470_v51 = vld [vmem:[#allocation9 + $0x1cc] ss:$12 sps:$4 sm:$0xff]   ;;  %v1477_v58 = vld [vmem:[#allocation9 + $0x1e8] ss:$12 sps:$4 sm:$0xff]  }
  0x8f   :  { %1030 = vmatprep.subr.bf16.mxu0 %v1438_v53  ;;  %v1468_v53 = vld [vmem:[#allocation9 + $0x1c8] ss:$12 sps:$4 sm:$0xff]  }
  0x91   :  { %1332 = vmatpush3.bf16.msra.mxu1 %v1447_v60  ;;  %v1480_v60 = vld [vmem:[#allocation9 + $0x1fc] ss:$12 sps:$4 sm:$0xff]  }
  0x92   :  { %1031 = vmatpush1.bf16.msra.mxu0 %v1441_v55  ;;  %1333 = vmatprep.subr.bf16.mxu1 %v1450_v62  ;;  %v1475_v55 = vld [vmem:[#allocation9 + $0x1e4] ss:$12 sps:$4 sm:$0xff]  }
  0x93   :  { %1032 = vmatprep.subr.bf16.mxu0 %v1443_v57  ;;  %v1473_v57 = vld [vmem:[#allocation9 + $0x1e0] ss:$12 sps:$4 sm:$0xff]   ;;  %v1478_v62 = vld [vmem:[#allocation9 + $0x1f8] ss:$12 sps:$4 sm:$0xff]  }
  0x95   :  { %1334 = vmatpush3.bf16.msra.mxu1 %v1452_v0 }
  0x96   :  { %1033 = vmatpush1.bf16.msra.mxu0 %v1446_v59  ;;  %1341 = vmatprep.subr.bf16.mxu1 %v1456_v2  ;;  %v1769_v59 = vsub.s32 2, %v1749_v8  ;;  %v1486_v2 = vld [vmem:[#allocation9 + $0x2d8] ss:$12 sps:$4 sm:$0xff]   ;;  %v1488_v8 = vld [vmem:[#allocation9 + $0x228] ss:$12 sps:$4 sm:$0xff]  }
  0x97   :  { %1034 = vmatprep.subr.bf16.mxu0 %v1448_v61  ;;  %v1481_v61 = vld [vmem:[#allocation9 + $0x2c0] ss:$12 sps:$4 sm:$0xff]  }
  0x98   :  { %v327_v0 = vrot.slane %v1757_v14, %v1769_v59 }
  0x9a   :  { %1035 = vmatpush1.bf16.msra.mxu0 %v1451_v63  ;;  %v1482_v63 = vld [vmem:[#allocation9 + $0x200] ss:$12 sps:$4 sm:$0xff]  }
  0x9b   :  { %1045 = vmatprep.subr.bf16.mxu0 %v1455_v1  ;;  %v1485_v1 = vld [vmem:[#allocation9 + $0x214] ss:$12 sps:$4 sm:$0xff]  }
 0x133   :  { %v161_v3 = vpop.f32.mrb[0].mxu1 }
 0x134   :  { %v163_v4 = vpop.f32.mrb[1].mxu1 }
 0x135   :  { %v165_v5 = vpop.f32.mrb[2].mxu1 }
 0x136   :  { %v166_v6 = vpop.f32.mrb[3].mxu1 }
 0x137   :  { %v1490_v6 = vld [vmem:[#allocation9 + $0x22c] ss:$12 sps:$4 sm:$0xff]  }
 0x13b   :  { %v202_v9 = vpop.f32.mrb[4].mxu1 }
 0x13c   :  { %v204_v10 = vpop.f32.mrb[5].mxu1 }
 0x13d   :  { %v206_v11 = vpop.f32.mrb[6].mxu1 }
 0x13e   :  { %v207_v12 = vpop.f32.mrb[7].mxu1  ;;  %v1495_v11 = vld [vmem:[#allocation9 + $0x244] ss:$12 sps:$4 sm:$0xff]  }
 0x13f   :  { %v1493_v12 = vld [vmem:[#allocation9 + $0x240] ss:$12 sps:$4 sm:$0xff]  }
 0x143   :  { %v267_v17 = vpop.f32.mrb[8].mxu1 }
 0x144   :  { %v268_v19 = vadd.f32 %v267_v17, %v161_v3  ;;  %v269_v20 = vpop.f32.mrb[9].mxu1  ;;  %v1483_v3 = vld [vmem:[#allocation9 + $0x210] ss:$12 sps:$4 sm:$0xff]   ;;  %v1496_v17 = vld [vmem:[#allocation9 + $0x258] ss:$12 sps:$4 sm:$0xff]  }
 0x145   :  { %v270_v21 = vadd.f32 %v269_v20, %v163_v4  ;;  %v271_v22 = vpop.f32.mrb[10].mxu1  ;;  %v1487_v4 = vld [vmem:[#allocation9 + $0x218] ss:$12 sps:$4 sm:$0xff]  }
 0x146   :  { %v336_v23 = vadd.f32 %v319_v16, %v268_v19  ;;  %v272_v24 = vpop.f32.mrb[11].mxu1  ;;  %v1498_v16 = vld [vmem:[#allocation9 + $0x25c] ss:$12 sps:$4 sm:$0xff]   ;;  %v1504_v20 = vld [vmem:[#allocation9 + $0x28c] ss:$12 sps:$4 sm:$0xff]  }
 0x147   :  { %v337_v26 = vadd.f32 %v323_v18, %v270_v21  ;;  %v1501_v18 = vld [vmem:[#allocation9 + $0x274] ss:$12 sps:$4 sm:$0xff]   ;;  %v1499_v19 = vld [vmem:[#allocation9 + $0x270] ss:$12 sps:$4 sm:$0xff]  }
 0x148   :  { %v340_v27 = vmax.f32 %v336_v23, 0.0  ;;  %v1502_v21 = vld [vmem:[#allocation9 + $0x288] ss:$12 sps:$4 sm:$0xff]   ;;  %v1507_v22 = vld [vmem:[#allocation9 + $0x2a4] ss:$12 sps:$4 sm:$0xff]  }
 0x149   :  { %v341_v28 = vmax.f32 %v337_v26, 0.0  ;;  %v1505_v23 = vld [vmem:[#allocation9 + $0x2a0] ss:$12 sps:$4 sm:$0xff]   ;;  %v1510_v24 = vld [vmem:[#allocation9 + $0x2bc] ss:$12 sps:$4 sm:$0xff]  }
 0x14a   :  { %v344_v34 = vpack.c.bf16 %v340_v27, %v340_v27  ;;  %v1513_v26 = vld [vmem:[#allocation9 + $0x2d4] ss:$12 sps:$4 sm:$0xff]   ;;  %v1511_v27 = vld [vmem:[#allocation9 + $0x2d0] ss:$12 sps:$4 sm:$0xff]  }
 0x14b   :  { %v308_v29 = vpop.f32.mrb[12].mxu1  ;;  %v345_v31 = vpack.c.bf16 %v341_v28, %v341_v28  ;;  %v1516_v28 = vld [vmem:[#allocation9 + $0x2ec] ss:$12 sps:$4 sm:$0xff]  }
 0x14c   :  { %v309_v35 = vadd.f32 %v308_v29, %v202_v9  ;;  %v310_v36 = vpop.f32.mrb[13].mxu1  ;;  %v1492_v9 = vld [vmem:[#allocation9 + $0x230] ss:$12 sps:$4 sm:$0xff]   ;;  %v1514_v29 = vld [vmem:[#allocation9 + $0x2e8] ss:$12 sps:$4 sm:$0xff]  }
 0x14d   :  { %v311_v39 = vadd.f32 %v310_v36, %v204_v10  ;;  %1036 = vmatprep.mubr.bf16.mxu0 %v345_v31  ;;  %1118 = vmatprep.mubr.bf16.mxu1 %v345_v31  ;;  %v312_v40 = vpop.f32.mrb[14].mxu1 }
 0x14e   :  { %1037 = vmatmul.mubr.bf16.vlgmr.msra.gmra.mrb[0].mxu0 %v344_v34  ;;  %1119 = vmatmul.mubr.bf16.vlgmr.msra.gmra.mrb[16].mxu1 %v344_v34  ;;  %v313_v41 = vpop.f32.mrb[15].mxu1  ;;  %v338_v5 = vadd.f32 %v327_v0, %v309_v35  ;;  %v87_v35 = vld [vmem:[%s1796_s5 + $0x4] sm:$0x7] }
 0x14f   :  { %v339_v42 = vadd.f32 %v331_v30, %v311_v39  ;;  %1046 = vmatpush1.bf16.msra.mxu0 %v1453_v32  ;;  %1342 = vmatpush3.bf16.msra.mxu1 %v1457_v33  ;;  %v488_v36 = vrot.slane %v87_v35, %v1769_v59 }
 0x150   :  { %1047 = vmatprep.subr.bf16.mxu0 %v1460_v37  ;;  %1343 = vmatprep.subr.bf16.mxu1 %v1461_v38  ;;  %v342_v10 = vmax.f32 %v338_v5, 0.0 }
 0x151   :  { %v343_v47 = vmax.f32 %v339_v42, 0.0 }
 0x152   :  { %v346_v14 = vpack.c.bf16 %v342_v10, %v342_v10 }
 0x153   :  { %v347_v48 = vpack.c.bf16 %v343_v47, %v343_v47  ;;  %1048 = vmatpush1.bf16.msra.mxu0 %v1458_v43  ;;  %1344 = vmatpush3.bf16.msra.mxu1 %v1462_v44  ;;  %v480_v44 = vrot.slane %v87_v35, %v1752_v13 }
 0x154   :  { %1049 = vmatprep.subr.bf16.mxu0 %v1465_v45  ;;  %1345 = vmatprep.subr.bf16.mxu1 %v1466_v46  ;;  %v484_v45 = vrot.slane %v87_v35, %v1760_v15  ;;  %v88_v46 = vld [vmem:[%s1796_s5 + $0x7] sm:$0x7] }
 0x155   :  { %1077 = vmatprep.mubr.bf16.mxu0 %v347_v48  ;;  %1158 = vmatprep.mubr.bf16.mxu1 %v347_v48 }
 0x157   :  { %1050 = vmatpush1.bf16.msra.mxu0 %v1463_v49  ;;  %1346 = vmatpush3.bf16.msra.mxu1 %v1467_v50  ;;  %v1173_v49 = vrot.slane %v88_v46, %v1752_v13  ;;  %v1318_v13 = vld [vmem:[%s1796_s5 + $0xa] ss:$0 sm:$0xff] }
 0x158   :  { %1051 = vmatprep.subr.bf16.mxu0 %v1470_v51  ;;  %1347 = vmatprep.subr.bf16.mxu1 %v1471_v52  ;;  %v1177_v52 = vrot.slane %v88_v46, %v1760_v15 }
 0x15b   :  { %1052 = vmatpush1.bf16.msra.mxu0 %v1468_v53  ;;  %1348 = vmatpush3.bf16.msra.mxu1 %v1472_v54 }
 0x15c   :  { %1053 = vmatprep.subr.bf16.mxu0 %v1475_v55  ;;  %1349 = vmatprep.subr.bf16.mxu1 %v1476_v56 }
 0x15f   :  { %1054 = vmatpush1.bf16.msra.mxu0 %v1473_v57  ;;  %1350 = vmatpush3.bf16.msra.mxu1 %v1477_v58  ;;  %v1181_v58 = vrot.slane %v88_v46, %v1769_v59 }
 0x160   :  { %1055 = vmatprep.subr.bf16.mxu0 %v1480_v60  ;;  %1351 = vmatprep.subr.bf16.mxu1 %v1481_v61 }
 0x163   :  { %1056 = vmatpush1.bf16.msra.mxu0 %v1478_v62  ;;  %1352 = vmatpush3.bf16.msra.mxu1 %v1482_v63 }
 0x164   :  { %1057 = vmatprep.subr.bf16.mxu0 %v1485_v1  ;;  %1353 = vmatprep.subr.bf16.mxu1 %v1486_v2 }
 0x167   :  { %1058 = vmatpush1.bf16.msra.mxu0 %v1483_v3  ;;  %1354 = vmatpush3.bf16.msra.mxu1 %v1487_v4 }
 0x168   :  { %1059 = vmatprep.subr.bf16.mxu0 %v1490_v6  ;;  %1355 = vmatprep.subr.bf16.mxu1 %v1491_v7 }
 0x16b   :  { %1060 = vmatpush1.bf16.msra.mxu0 %v1488_v8  ;;  %1356 = vmatpush3.bf16.msra.mxu1 %v1492_v9 }
 0x16c   :  { %1061 = vmatprep.subr.bf16.mxu0 %v1495_v11 }
 0x16e   :  { %1159 = vmatmul.mubr.bf16.vlgmr.msra.gmra.mrb[20].mxu1 %v346_v14 }
 0x16f   :  { %1062 = vmatpush1.bf16.msra.mxu0 %v1493_v12 }
 0x170   :  { %1063 = vmatprep.subr.bf16.mxu0 %v1498_v16 }
 0x173   :  { %1064 = vmatpush1.bf16.msra.mxu0 %v1496_v17 }
 0x174   :  { %1065 = vmatprep.subr.bf16.mxu0 %v1501_v18 }
 0x177   :  { %1066 = vmatpush1.bf16.msra.mxu0 %v1499_v19 }
 0x178   :  { %1067 = vmatprep.subr.bf16.mxu0 %v1504_v20 }
 0x17b   :  { %1068 = vmatpush1.bf16.msra.mxu0 %v1502_v21 }
 0x17c   :  { %1069 = vmatprep.subr.bf16.mxu0 %v1507_v22 }
 0x17f   :  { %1070 = vmatpush1.bf16.msra.mxu0 %v1505_v23 }
 0x180   :  { %1071 = vmatprep.subr.bf16.mxu0 %v1510_v24 }
 0x183   :  { %1072 = vmatpush1.bf16.msra.mxu0 %v1508_v25 }
 0x184   :  { %1073 = vmatprep.subr.bf16.mxu0 %v1513_v26 }
 0x187   :  { %1074 = vmatpush1.bf16.msra.mxu0 %v1511_v27 }
 0x188   :  { %1075 = vmatprep.subr.bf16.mxu0 %v1516_v28 }
 0x18b   :  { %1076 = vmatpush1.bf16.msra.mxu0 %v1514_v29 }
 0x18e   :  { %1078 = vmatmul.mubr.bf16.vlgmr.msra.gmra.mrb[0].mxu0 %v346_v14 }
 0x221   :  { %v1335_v30 = vpop.f32.mrb[16].mxu1 }
 0x222   :  { %v1336_v31 = vpop.f32.mrb[17].mxu1 }
 0x223   :  { %v1337_v32 = vadd.f32 %v1336_v31, %v1335_v30  ;;  %v1338_v33 = vpop.f32.mrb[18].mxu1 }
 0x224   :  { %v1339_v34 = vpop.f32.mrb[19].mxu1 }
 0x225   :  { %v1121_v39 = vadd.f32 %v1337_v32, %v488_v36 }
 0x241   :  { %v1357_v37 = vpop.f32.mrb[20].mxu1 }
 0x242   :  { %v1358_v38 = vpop.f32.mrb[21].mxu1 }
 0x243   :  { %v1359_v40 = vadd.f32 %v1358_v38, %v1357_v37  ;;  %v1360_v41 = vpop.f32.mrb[22].mxu1 }
 0x244   :  { %v1361_v42 = vpop.f32.mrb[23].mxu1 }
 0x245   :  { %v1161_v43 = vadd.f32 %v1359_v40, %v1121_v39 }
 0x247   :  { %v1168_v56 = vmax.f32 %v1161_v43, 0.0 }
 0x249   :  { %v1187_v62 = vmul.f32 %v1181_v58, %v1168_v56 }
 0x261   :  { %v1079_v47 = vpop.f32.mrb[0].mxu0 }
 0x262   :  { %v1363_v48 = vadd.f32 %v1079_v47, %v480_v44  ;;  %v1081_v50 = vpop.f32.mrb[1].mxu0 }
 0x263   :  { %v1364_v51 = vadd.f32 %v1081_v50, %v484_v45  ;;  %v1083_v53 = vpop.f32.mrb[2].mxu0 }
 0x264   :  { %v1166_v54 = vmax.f32 %v1363_v48, 0.0  ;;  %v1084_v55 = vpop.f32.mrb[3].mxu0 }
 0x265   :  { %v1167_v57 = vmax.f32 %v1364_v51, 0.0 }
 0x266   :  { %v1185_v60 = vmul.f32 %v1173_v49, %v1166_v54 }
 0x267   :  { %v1186_v61 = vmul.f32 %v1177_v52, %v1167_v57 }
 0x269   :  { %v1188_v63 = vadd.f32 %v1186_v61, %v1185_v60 }
 0x26b   :  { %v1189_v0 = vadd.f32 %v1188_v63, %v1187_v62 }
 0x26d   :  { %1190 = vadd.xlane.f32.xlu0 %v1189_v0 }
 0x2fa   :  { %v1191_v1 = vpop.xlane.xlu0 %1190 }
 0x2fb   :  { %v1198_v15 = vadd.f32 %v1318_v13, %v1191_v1 }
 0x2fd   :  { %1200 = vst.msk [vmem:[%s1797_s6] sm:$0xff] %vm1199_vm3, %v1198_v15 }
 0x2fe   :  { %1205 = vsyncpa [#allocation3], 1 }
 0x2ff   :  { %1206 = vsyncpa [#allocation5], 1 }
 0x300   :  { %1207 = vsyncpa [#allocation8], 1 }

</bundles_post_ra>
